<compile_context>
chip_gen: v7x
topology: tpu7x:2x2x1
jax: 0.10.0
libtpu: 0.0.40
codegen_flags: <defaults>
</compile_context>

<pallas_src>
import functools

import jax
import jax.numpy as jnp
from jax.experimental import pallas as pl
from jax.experimental.pallas import tpu as pltpu

FILTER_SIZES = (3, 4, 5)
MAX_FS = max(FILTER_SIZES)
NFS = len(FILTER_SIZES)
N_FILTERS = 100          # logical number of conv filters (torch)
F_PAD = 128              # lane-padded filter count used inside the kernel


def _cdiv(a, b):
    return -(-a // b)


def _round_up(a, m):
    return _cdiv(a, m) * m


def word_cnn_kernel(x_ref, w_ref, b_ref, o_ref, *, tb, l_pad, valid_lens):
    # x_ref: (tb*l_pad, K)    bf16 -- im2col windows, K = MAX_FS*D (padded to x8)
    # w_ref: (K, NFS*F_PAD)   bf16 -- packed conv weights, scaled by 1/3
    # b_ref: (NFS, F_PAD)     f32  -- one bias row per filter size, scaled by 1/3
    # o_ref: (tb, F_PAD)      f32  -- sum over filter sizes of ReLU(max_t conv + b) == mean
    p = jnp.dot(x_ref[...], w_ref[...],
                preferred_element_type=jnp.float32)        # (tb*l_pad, NFS*F_PAD), one MXU pass
    p = p.reshape(tb, l_pad, NFS * F_PAD)                  # clean sublane split (l_pad % 8 == 0)
    biases = b_ref[...]                                    # (NFS, F_PAD)

    acc = None
    for idx, vl in enumerate(valid_lens):                  # static per-filter valid lengths
        col = idx * F_PAD                                  # lane-aligned (multiple of 128)
        # time slice starts at 0 (no misaligned sublane slices); max over valid positions only
        pooled = jnp.max(p[:, :vl, col:col + F_PAD], axis=1)          # (tb, F_PAD)
        # bias + ReLU AFTER the max: exact since ReLU is monotone and bias is time-invariant
        pooled = jnp.maximum(pooled + biases[idx][None, :], 0.0)
        acc = pooled if acc is None else acc + pooled
    o_ref[...] = acc                                       # 1/3 already folded into W and b


def _choose_batch_tile(batch, l_pad, k_pad, budget_bytes=8 << 20):
    # Budget the per-step f32 scores (NFS*128 lanes) + the double-buffered bf16
    # input block against an explicit byte budget (safe under the 32 MiB scoped
    # VMEM limit we request, on every generation including v7x).
    bytes_per_row = NFS * F_PAD * 4 + 2 * 2 * k_pad
    max_rows = max(8, budget_bytes // bytes_per_row)
    tb_cap = max(8, min(512, (max_rows // max(l_pad, 1)) // 8 * 8))
    b8 = _round_up(batch, 8)
    tb_cap = min(tb_cap, b8)
    n_tiles = _cdiv(b8, tb_cap)
    if b8 >= 16:
        n_tiles = max(n_tiles, 2)     # >=2 parallel grid steps -> both v7x TensorCores
    tb = _round_up(_cdiv(b8, n_tiles), 8)
    return tb


def word_level_cnn(x_tokens, embed_table, conv_weights, conv_biases):
    """x_tokens: (seq_len, batch) int32.  Returns (1, batch, N_FILTERS) float32."""
    seq_len, batch = x_tokens.shape
    words_dim = embed_table.shape[1]
    if seq_len < MAX_FS:
        raise ValueError("seq_len must be >= max filter size (5)")

    # Embedding lookup + permute(1,0,2) (wrapper glue); bf16 to halve HBM traffic.
    # TODO(synk): fuse this gather into the kernel (see header note).
    emb = jnp.take(embed_table.astype(jnp.bfloat16), x_tokens.T, axis=0)  # (B, S, D) bf16

    # --- wrapper-side im2col along time ------------------------------------
    # One row per conv output position; each row holds MAX_FS consecutive word
    # vectors.  Padded time rows only ever multiply zero weight rows, so they
    # never corrupt a valid window.
    l_max = seq_len - min(FILTER_SIZES) + 1                 # longest valid-conv output
    l_pad = _round_up(l_max, 8)
    t_need = l_pad + MAX_FS - 1
    emb = jnp.pad(emb, ((0, 0), (0, t_need - seq_len), (0, 0)))
    xw = jnp.concatenate([emb[:, r:r + l_pad, :] for r in range(MAX_FS)],
                         axis=-1)                           # (B, l_pad, MAX_FS*D) bf16
    k_dim = MAX_FS * words_dim
    k_pad = _round_up(k_dim, 8)
    if k_pad != k_dim:
        xw = jnp.pad(xw, ((0, 0), (0, 0), (0, k_pad - k_dim)))

    # --- batch tiling --------------------------------------------------------
    tb = _choose_batch_tile(batch, l_pad, k_pad)
    b_pad = _round_up(batch, tb)
    if b_pad != batch:
        xw = jnp.pad(xw, ((0, b_pad - batch), (0, 0), (0, 0)))
    x2d = xw.reshape(b_pad * l_pad, k_pad)                  # (B_pad*l_pad, K) bf16

    # --- pack conv weights along K (im2col layout); fold the 1/3 mean --------
    inv = 1.0 / float(NFS)
    w_all = jnp.zeros((k_pad, NFS * F_PAD), jnp.float32)
    for idx, (fs, w) in enumerate(zip(FILTER_SIZES, conv_weights)):  # w: (fs, D, N_FILTERS)
        w_flat = (w * inv).reshape(fs * words_dim, N_FILTERS)        # row r*D+d == w[r, d, :]
        w_all = w_all.at[:fs * words_dim,
                         idx * F_PAD: idx * F_PAD + N_FILTERS].set(w_flat)
    w_all = w_all.astype(jnp.bfloat16)                      # (K, NFS*F_PAD)
    b_all = jnp.zeros((NFS, F_PAD), jnp.float32)
    b_all = b_all.at[:, :N_FILTERS].set(jnp.stack(conv_biases, axis=0) * inv)

    valid_lens = tuple(seq_len - fs + 1 for fs in FILTER_SIZES)
    kernel = functools.partial(word_cnn_kernel, tb=tb, l_pad=l_pad,
                               valid_lens=valid_lens)

    out = pl.pallas_call(
        kernel,
        out_shape=jax.ShapeDtypeStruct((b_pad, F_PAD), jnp.float32),
        grid_spec=pltpu.PrefetchScalarGridSpec(
            num_scalar_prefetch=0,
            grid=(b_pad // tb,),
            in_specs=[
                pl.BlockSpec((tb * l_pad, k_pad), lambda i: (i, 0)),
                pl.BlockSpec((k_pad, NFS * F_PAD), lambda i: (0, 0)),
                pl.BlockSpec((NFS, F_PAD), lambda i: (0, 0)),
            ],
            out_specs=pl.BlockSpec((tb, F_PAD), lambda i: (i, 0)),
        ),
        compiler_params=pltpu.CompilerParams(
            dimension_semantics=("parallel",),
            vmem_limit_bytes=32 * 1024 * 1024),
    )(x2d, w_all, b_all)

    return out[:batch, :N_FILTERS][None]                    # (1, B, 100)


def _reference(x_tokens, embed_table, conv_weights, conv_biases):
    """Pure-JAX f32 reference mirroring the PyTorch forward."""
    emb = jnp.take(embed_table, x_tokens, axis=0)            # (S, B, D)
    emb = jnp.transpose(emb, (1, 0, 2)).astype(jnp.float32)  # (B, S, D)
    B, S, D = emb.shape
    pooled = []
    for (fs, w, bias) in zip(FILTER_SIZES, conv_weights, conv_biases):
        L = S - fs + 1
        sc = jnp.zeros((B, L, N_FILTERS), jnp.float32)
        for r in range(fs):
            sc = sc + jnp.einsum('bld,df->blf', emb[:, r:r + L, :], w[r])
        sc = jax.nn.relu(sc + bias[None, None, :])
        pooled.append(jnp.max(sc, axis=1))                   # (B, F)
    mean = jnp.mean(jnp.stack(pooled, axis=-1), axis=-1)     # (B, F)
    return mean[None]                                        # (1, B, F)


if __name__ == "__main__":
    # Small, deterministic config: words_num(vocab)=50, words_dim=32, seq=8, batch=2.
    WORDS_NUM, WORDS_DIM, SEQ_LEN, BATCH = 50, 32, 8, 2

    key = jax.random.PRNGKey(0)
    k_emb, k_tok, k_w, k_b = jax.random.split(key, 4)

    # mode == 'rand': embedding table ~ U(-0.25, 0.25)
    embed_table = jax.random.uniform(
        k_emb, (WORDS_NUM, WORDS_DIM), jnp.float32, -0.25, 0.25)

    # Token ids, shape (seq_len, batch) as in the torchtext convention.
    x_tokens = jax.random.randint(k_tok, (SEQ_LEN, BATCH), 0, WORDS_NUM, jnp.int32)

    # Conv weights: generate in torch layout (F, 1, fs, D), then transpose to (fs, D, F).
    conv_weights, conv_biases = [], []
    for i, fs in enumerate(FILTER_SIZES):
        kw = jax.random.fold_in(k_w, i)
        kb = jax.random.fold_in(k_b, i)
        w_torch = jax.random.normal(kw, (N_FILTERS, 1, fs, WORDS_DIM), jnp.float32) * 0.1
        conv_weights.append(jnp.transpose(w_torch[:, 0], (1, 2, 0)))  # (fs, D, F)
        conv_biases.append(jax.random.normal(kb, (N_FILTERS,), jnp.float32) * 0.1)

    out = word_level_cnn(x_tokens, embed_table, conv_weights, conv_biases)
    out = jax.block_until_ready(out)

    ref = _reference(x_tokens, embed_table, conv_weights, conv_biases)
    assert out.shape == (1, BATCH, N_FILTERS), out.shape
    # bf16 activations/weights on the MXU path -> loosened tolerance vs f32 reference.
    assert jnp.allclose(out, ref, atol=1e-2, rtol=1e-2), "mismatch vs reference"

    print("KERNEL_OK")
</pallas_src>

<mosaic_0001>
module attributes {stable_mosaic.version = 11 : i64} {
  func.func @word_cnn_kernel(%arg0: i32, %arg1: memref<64x160xbf16, #tpu.memory_space<vmem>>, %arg2: memref<160x384xbf16, #tpu.memory_space<vmem>>, %arg3: memref<3x128xf32, #tpu.memory_space<vmem>>, %arg4: memref<8x128xf32, #tpu.memory_space<vmem>>) attributes {dimension_semantics = [#tpu.dimension_semantics<parallel>], iteration_bounds = array<i64: 1>, scalar_prefetch = 0 : i64, scratch_operands = 0 : i64, tpu.core_type = #tpu.core_type<tc>, window_params = [{transform_indices = @transform_0, window_bounds = array<i64: 64, 160>}, {pipeline_mode = #tpu.pipeline_mode<synchronous>, transform_indices = @transform_1, window_bounds = array<i64: 160, 384>}, {pipeline_mode = #tpu.pipeline_mode<synchronous>, transform_indices = @transform_2, window_bounds = array<i64: 3, 128>}, {transform_indices = @transform_3, window_bounds = array<i64: 8, 128>}]} {
    %c0 = arith.constant 0 : index
    %c0_0 = arith.constant 0 : index
    %0 = vector.load %arg1[%c0, %c0_0] : memref<64x160xbf16, #tpu.memory_space<vmem>>, vector<64x160xbf16>
    %c0_1 = arith.constant 0 : index
    %c0_2 = arith.constant 0 : index
    %1 = vector.load %arg2[%c0_1, %c0_2] : memref<160x384xbf16, #tpu.memory_space<vmem>>, vector<160x384xbf16>
    %cst = arith.constant dense<0.000000e+00> : vector<64x384xf32>
    %2 = tpu.matmul %0, %1, %cst {dimension_numbers = #tpu.dot_dimension_numbers<[1], [0], [0], [1], [0, 0, 1, 1], [], []>} : vector<64x160xbf16>, vector<160x384xbf16>, vector<64x384xf32> -> vector<64x384xf32>
    %3 = vector.shape_cast %2 : vector<64x384xf32> to vector<8x8x384xf32>
    %c0_3 = arith.constant 0 : index
    %c0_4 = arith.constant 0 : index
    %4 = vector.load %arg3[%c0_3, %c0_4] : memref<3x128xf32, #tpu.memory_space<vmem>>, vector<3x128xf32>
    %5 = vector.extract_strided_slice %3 {offsets = [0, 0, 0], sizes = [8, 6, 128], strides = [1, 1, 1]} : vector<8x8x384xf32> to vector<8x6x128xf32>
    %cst_5 = arith.constant dense<0xFF800000> : vector<8x128xf32>
    %6 = vector.multi_reduction <maximumf>, %5, %cst_5 [1] : vector<8x6x128xf32> to vector<8x128xf32>
    %7 = vector.extract_strided_slice %4 {offsets = [0, 0], sizes = [1, 128], strides = [1, 1]} : vector<3x128xf32> to vector<1x128xf32>
    %8 = vector.shape_cast %7 : vector<1x128xf32> to vector<128xf32>
    %9 = vector.shape_cast %8 : vector<128xf32> to vector<1x128xf32>
    %10 = vector.broadcast %9 : vector<1x128xf32> to vector<8x128xf32>
    %11 = arith.addf %6, %10 : vector<8x128xf32>
    %cst_6 = arith.constant 0.000000e+00 : f32
    %12 = vector.broadcast %cst_6 : f32 to vector<8x128xf32>
    %13 = arith.maximumf %11, %12 : vector<8x128xf32>
    %14 = vector.extract_strided_slice %3 {offsets = [0, 0, 128], sizes = [8, 5, 128], strides = [1, 1, 1]} : vector<8x8x384xf32> to vector<8x5x128xf32>
    %cst_7 = arith.constant dense<0xFF800000> : vector<8x128xf32>
    %15 = vector.multi_reduction <maximumf>, %14, %cst_7 [1] : vector<8x5x128xf32> to vector<8x128xf32>
    %16 = vector.extract_strided_slice %4 {offsets = [1, 0], sizes = [1, 128], strides = [1, 1]} : vector<3x128xf32> to vector<1x128xf32>
    %17 = vector.shape_cast %16 : vector<1x128xf32> to vector<128xf32>
    %18 = vector.shape_cast %17 : vector<128xf32> to vector<1x128xf32>
    %19 = vector.broadcast %18 : vector<1x128xf32> to vector<8x128xf32>
    %20 = arith.addf %15, %19 : vector<8x128xf32>
    %cst_8 = arith.constant 0.000000e+00 : f32
    %21 = vector.broadcast %cst_8 : f32 to vector<8x128xf32>
    %22 = arith.maximumf %20, %21 : vector<8x128xf32>
    %23 = arith.addf %13, %22 : vector<8x128xf32>
    %24 = vector.extract_strided_slice %3 {offsets = [0, 0, 256], sizes = [8, 4, 128], strides = [1, 1, 1]} : vector<8x8x384xf32> to vector<8x4x128xf32>
    %cst_9 = arith.constant dense<0xFF800000> : vector<8x128xf32>
    %25 = vector.multi_reduction <maximumf>, %24, %cst_9 [1] : vector<8x4x128xf32> to vector<8x128xf32>
    %26 = vector.extract_strided_slice %4 {offsets = [2, 0], sizes = [1, 128], strides = [1, 1]} : vector<3x128xf32> to vector<1x128xf32>
    %27 = vector.shape_cast %26 : vector<1x128xf32> to vector<128xf32>
    %28 = vector.shape_cast %27 : vector<128xf32> to vector<1x128xf32>
    %29 = vector.broadcast %28 : vector<1x128xf32> to vector<8x128xf32>
    %30 = arith.addf %25, %29 : vector<8x128xf32>
    %cst_10 = arith.constant 0.000000e+00 : f32
    %31 = vector.broadcast %cst_10 : f32 to vector<8x128xf32>
    %32 = arith.maximumf %30, %31 : vector<8x128xf32>
    %33 = arith.addf %23, %32 : vector<8x128xf32>
    %c0_11 = arith.constant 0 : index
    %c0_12 = arith.constant 0 : index
    %34 = vector.load %arg4[%c0_11, %c0_12] : memref<8x128xf32, #tpu.memory_space<vmem>>, vector<8x128xf32>
    tpu.vector_store %arg4[%c0_11, %c0_12], %33 {strides = array<i32>} : memref<8x128xf32, #tpu.memory_space<vmem>>, vector<8x128xf32>,
    return
  }
  func.func @transform_0(%arg0: i32) -> (i32, i32) {
    %c0_i32 = arith.constant 0 : i32
    %c0_i32_0 = arith.constant 0 : i32
    return %arg0, %c0_i32 : i32, i32
  }
  func.func @transform_1(%arg0: i32) -> (i32, i32) {
    %c0_i32 = arith.constant 0 : i32
    %c0_i32_0 = arith.constant 0 : i32
    %c0_i32_1 = arith.constant 0 : i32
    return %c0_i32, %c0_i32_0 : i32, i32
  }
  func.func @transform_2(%arg0: i32) -> (i32, i32) {
    %c0_i32 = arith.constant 0 : i32
    %c0_i32_0 = arith.constant 0 : i32
    %c0_i32_1 = arith.constant 0 : i32
    return %c0_i32, %c0_i32_0 : i32, i32
  }
  func.func @transform_3(%arg0: i32) -> (i32, i32) {
    %c0_i32 = arith.constant 0 : i32
    %c0_i32_0 = arith.constant 0 : i32
    return %arg0, %c0_i32 : i32, i32
  }
}

</mosaic_0001>

<bundles_post_ra>
// kernel: tpu_custom_call.1
= control target key start
LH: loop header
LB: loop body
LE: loop exit
PB: predicated region body
PF: predicated region fallthrough
CT: control target
= control target key end

     0   :  { %8 = vsyncpa [#allocation3], 0  ;;  %s1101_s0 = inlined_call_operand.hbm [shape: bf16[64,160], index: 0, kind: input, shape index: {}]   ;;  %s1102_s1 = inlined_call_operand.hbm [shape: bf16[160,384], index: 1, kind: input, shape index: {}]   ;;  %s1103_s2 = inlined_call_operand.vmem [shape: f32[3,128], index: 2, kind: input, shape index: {}]   ;;  %s1104_s3 = inlined_call_operand.hbm [shape: f32[8,128], index: 3, kind: output, shape index: {}]  }
   0x1   :  { %9 = vsyncpa [#allocation6], 0 }
   0x2   :  { %10 = vsyncpa [#allocation4], 0  ;;  %s912_s12 = smov [#allocation2]   ;;  %s840_s16 = scalar_lea.hbm %s1101_s0, 1024 }
   0x3   :  { %s16_s13 = sshll.u32 %s912_s12, 4  ;;  %p841_p0 = scmp.ne.s32.totalorder %s1101_s0, %s840_s16  ;;  %s17_s13 = int_to_ptr.vmem [resolvable:$true] %s16_s13 }
   0x4   :  { %p844_p1 = scmp.lt.u32.totalorder %s840_s16, %s1101_s0 }
   0x6   :  { %p846_p2 = pnand %p844_p1, %p841_p0 }
   0x8   :  { %849 = shalt.err (!%p846_p2)
}
   0x9   :  { %s850_s21 = scalar_lea.vmem %s17_s13, 1024  ;;  %p855_p4 = scmp.lt.s32.totalorder %s17_s13, %s17_s13 }
   0xa   :  { %p851_p3 = scmp.ne.s32.totalorder %s17_s13, %s850_s21  ;;  %p856_p5 = scmp.lt.s32.totalorder %s850_s21, %s850_s21 }
   0xc   :  { %p857_p6 = por %p856_p5, %p855_p4 }
   0xe   :  { %p858_p7 = pnand %p857_p6, %p851_p3 }
  0x10   :  { %861 = shalt.err (!%p858_p7)
}
  0x11   :  { %s913_s22 = smov 128   ;;  %s914_s23 = smov 8  }
  0x12   :  { %22 = dma.hbm_to_vmem [thread:$0]  %s1101_s0, 1024, %s17_s13, [#allocation3], %s913_s22, %s913_s22, %s914_s23  }
  0x13   :  { %s915_s26 = smov [#allocation5]   ;;  %s862_s30 = scalar_lea.hbm %s1102_s1, 3840 }
  0x14   :  { %s28_s27 = sshll.u32 %s915_s26, 4  ;;  %p863_p8 = scmp.ne.s32.totalorder %s1102_s1, %s862_s30  ;;  %s29_s27 = int_to_ptr.vmem [resolvable:$true] %s28_s27 }
  0x15   :  { %p866_p9 = scmp.lt.u32.totalorder %s862_s30, %s1102_s1 }
  0x17   :  { %p868_p10 = pnand %p866_p9, %p863_p8 }
  0x19   :  { %871 = shalt.err (!%p868_p10)
}
  0x1a   :  { %s872_s8 = scalar_lea.vmem %s29_s27, 3840  ;;  %p877_p12 = scmp.lt.s32.totalorder %s29_s27, %s29_s27 }
  0x1b   :  { %p873_p11 = scmp.ne.s32.totalorder %s29_s27, %s872_s8  ;;  %p878_p13 = scmp.lt.s32.totalorder %s872_s8, %s872_s8 }
  0x1d   :  { %p879_p0 = por %p878_p13, %p877_p12 }
  0x1f   :  { %p880_p1 = pnand %p879_p0, %p873_p11 }
  0x21   :  { %883 = shalt.err (!%p880_p1)
}
  0x22   :  { %s916_s0 = smov 192   ;;  %s917_s9 = smov 12  }
  0x23   :  { %34 = dma.hbm_to_vmem [thread:$0]  %s1102_s1, 3840, %s29_s27, [#allocation6], %s916_s0, %s916_s0, %s917_s9  }
  0x24   :  { %906 = dma.done.wait [#allocation3], 1024  }
  0x25   :  { %907 = vsyncadd [#allocation3], 4294966272 }
  0x26   :  { %908 = dma.done.wait [#allocation6], 3840  }
  0x27   :  { %909 = vsyncadd [#allocation6], 4294963456  ;;  %v918_v0 = vmov 0   ;;  %v788_v1 = vld [vmem:[#allocation5 + $0x4] ss:$12 sps:$4 sm:$0xff]   ;;  %vm288_vm0 = vcmask 261120   ;;  %v497_v39 = vlaneseq }
  0x28   :  { %374 = vmatprep.subr.bf16.mxu1 %v918_v0  ;;  %v790_v2 = vld [vmem:[#allocation5 + $0x8] ss:$12 sps:$4 sm:$0xff]   ;;  %301 = vmatprep.subr.bf16.mxu0 %v788_v1  ;;  %v791_v3 = vld [vmem:[#allocation5] ss:$12 sps:$4 sm:$0xff]   ;;  %v795_v6 = vld [vmem:[#allocation5 + $0x18] ss:$12 sps:$4 sm:$0xff]  }
  0x29   :  { %375 = vmatpush1.bf16.msra.mxu1 %v790_v2  ;;  %v792_v4 = vld [vmem:[#allocation5 + $0x1c] ss:$12 sps:$4 sm:$0xff]   ;;  %302 = vmatpush1.bf16.msra.mxu0 %v791_v3  ;;  %v794_v5 = vld [vmem:[#allocation5 + $0x20] ss:$12 sps:$4 sm:$0xff]   ;;  %v798_v8 = vld [vmem:[#allocation5 + $0x38] ss:$12 sps:$4 sm:$0xff]  }
  0x2a   :  { %376 = vmatprep.subr.bf16.mxu1 %v918_v0  ;;  %303 = vmatprep.subr.bf16.mxu0 %v792_v4  ;;  %v796_v7 = vld [vmem:[#allocation5 + $0x34] ss:$12 sps:$4 sm:$0xff]   ;;  %v799_v9 = vld [vmem:[#allocation5 + $0x30] ss:$12 sps:$4 sm:$0xff]   ;;  %v800_v10 = vld [vmem:[#allocation5 + $0x4c] ss:$12 sps:$4 sm:$0xff]  }
  0x2b   :  { %v802_v11 = vld [vmem:[#allocation5 + $0x50] ss:$12 sps:$4 sm:$0xff]   ;;  %v803_v12 = vld [vmem:[#allocation5 + $0x48] ss:$12 sps:$4 sm:$0xff]   ;;  %v807_v15 = vld [vmem:[#allocation5 + $0x60] ss:$12 sps:$4 sm:$0xff]  }
  0x2c   :  { %v804_v13 = vld [vmem:[#allocation5 + $0x64] ss:$12 sps:$4 sm:$0xff]   ;;  %v806_v14 = vld [vmem:[#allocation5 + $0x68] ss:$12 sps:$4 sm:$0xff]   ;;  %v810_v17 = vld [vmem:[#allocation5 + $0x80] ss:$12 sps:$4 sm:$0xff]  }
  0x2d   :  { %377 = vmatpush1.bf16.msra.mxu1 %v794_v5  ;;  %304 = vmatpush1.bf16.msra.mxu0 %v795_v6  ;;  %v808_v16 = vld [vmem:[#allocation5 + $0x7c] ss:$12 sps:$4 sm:$0xff]   ;;  %v811_v18 = vld [vmem:[#allocation5 + $0x78] ss:$12 sps:$4 sm:$0xff]   ;;  %v812_v19 = vld [vmem:[#allocation5 + $0x94] ss:$12 sps:$4 sm:$0xff]  }
  0x2e   :  { %378 = vmatprep.subr.bf16.mxu1 %v918_v0  ;;  %305 = vmatprep.subr.bf16.mxu0 %v796_v7  ;;  %v814_v20 = vld [vmem:[#allocation5 + $0x98] ss:$12 sps:$4 sm:$0xff]   ;;  %v815_v21 = vld [vmem:[#allocation5 + $0x90] ss:$12 sps:$4 sm:$0xff]   ;;  %v819_v25 = vld [vmem:[#allocation5 + $0xa8] ss:$12 sps:$4 sm:$0xff]  }
  0x2f   :  { %v830_v22 = vld [vmem:[#allocation2 + $0x4] ss:$8 sps:$4 sm:$0xff]   ;;  %v818_v24 = vld [vmem:[#allocation5 + $0xb0] ss:$12 sps:$4 sm:$0xff]   ;;  %v822_v27 = vld [vmem:[#allocation5 + $0xc8] ss:$12 sps:$4 sm:$0xff]  }
  0x30   :  { %v816_v23 = vld [vmem:[#allocation5 + $0xac] ss:$12 sps:$4 sm:$0xff]   ;;  %776 = vmatprep.mubr.msk.bf16.mxu1 %vm288_vm0, %v830_v22  ;;  %772 = vmatprep.mubr.msk.bf16.mxu0 %vm288_vm0, %v830_v22  ;;  %v820_v26 = vld [vmem:[#allocation5 + $0xc4] ss:$12 sps:$4 sm:$0xff]   ;;  %v824_v29 = vld [vmem:[#allocation5 + $0xdc] ss:$12 sps:$4 sm:$0xff]  }
  0x31   :  { %379 = vmatpush1.bf16.msra.mxu1 %v798_v8  ;;  %306 = vmatpush1.bf16.msra.mxu0 %v799_v9  ;;  %v823_v28 = vld [vmem:[#allocation5 + $0xc0] ss:$12 sps:$4 sm:$0xff]   ;;  %v827_v31 = vld [vmem:[#allocation5 + $0xd8] ss:$12 sps:$4 sm:$0xff]   ;;  %v831_v33 = vld [vmem:[#allocation2 + $0x14] ss:$8 sps:$4 sm:$0xff]  }
  0x32   :  { %380 = vmatprep.subr.bf16.mxu1 %v918_v0  ;;  %307 = vmatprep.subr.bf16.mxu0 %v800_v10  ;;  %v826_v30 = vld [vmem:[#allocation5 + $0xe0] ss:$12 sps:$4 sm:$0xff]   ;;  %v833_v34 = vld [vmem:[#allocation2 + $0x10] ss:$8 sps:$4 sm:$0xff]   ;;  %v837_v37 = vld [vmem:[#allocation2 + $0x34] ss:$8 sps:$4 sm:$0xff]  }
  0x33   :  { %v828_v32 = vld [vmem:[#allocation2] ss:$8 sps:$4 sm:$0xff]   ;;  %v834_v35 = vld [vmem:[#allocation2 + $0x24] ss:$8 sps:$4 sm:$0xff]   ;;  %v839_v38 = vld [vmem:[#allocation2 + $0x30] ss:$8 sps:$4 sm:$0xff]  }
  0x34   :  { %v836_v36 = vld [vmem:[#allocation2 + $0x20] ss:$8 sps:$4 sm:$0xff]   ;;  %v498_v40 = vshrl.u32 %v497_v39, 7  ;;  %vm602_vm1 = vcmask 1043456   ;;  %vm440_vm2 = vcmask 1045504   ;;  %vm517_vm3 = vcmask 1044480  }
  0x35   :  { %381 = vmatpush1.bf16.msra.mxu1 %v802_v11  ;;  %308 = vmatpush1.bf16.msra.mxu0 %v803_v12  ;;  %v439_v56 = vld [vmem:[%s1103_s2] sm:$0x7]  ;;  %vm696_vm4 = vcmask 1041409   ;;  %vm699_vm5 = vcmask 1042434   ;;  %vm702_vm6 = vcmask 1043459   ;;  %vm705_vm7 = vcmask 1044484  }
  0x36   :  { %382 = vmatprep.subr.bf16.mxu1 %v918_v0  ;;  %309 = vmatprep.subr.bf16.mxu0 %v804_v13  ;;  %v661_v46 = vsub.s32 2, %v498_v40  ;;  %v499_v51 = vsub.s32 0, %v498_v40  ;;  %v576_v63 = vsub.s32 1, %v498_v40  ;;  %vm708_vm8 = vcmask 1045509   ;;  %s919_s2 = smov [#allocation7]  }
  0x37   :  { %vm711_vm9 = vcmask 1046534   ;;  %s724_s13 = sshll.u32 %s919_s2, 4  ;;  %vm714_vm10 = vcmask 1047559   ;;  %s725_s13 = int_to_ptr.vmem [resolvable:$true] %s724_s13 }
  0x38   :  { %v991_v6 = vrot.slane %v439_v56, %v661_v46  ;;  %v993_v8 = vrot.slane %v439_v56, %v499_v51  ;;  %s884_s14 = scalar_lea.vmem %s725_s13, 128  ;;  %p889_p3 = scmp.lt.s32.totalorder %s725_s13, %s725_s13 }
  0x39   :  { %383 = vmatpush1.bf16.msra.mxu1 %v806_v14  ;;  %310 = vmatpush1.bf16.msra.mxu0 %v807_v15  ;;  %p885_p2 = scmp.ne.s32.totalorder %s725_s13, %s884_s14  ;;  %p890_p4 = scmp.lt.s32.totalorder %s884_s14, %s884_s14 }
  0x3a   :  { %384 = vmatprep.subr.bf16.mxu1 %v918_v0  ;;  %311 = vmatprep.subr.bf16.mxu0 %v808_v16  ;;  %v995_v16 = vrot.slane %v439_v56, %v576_v63 }
  0x3b   :  { %p891_p5 = por %p890_p4, %p889_p3 }
  0x3d   :  { %385 = vmatpush1.bf16.msra.mxu1 %v810_v17  ;;  %312 = vmatpush1.bf16.msra.mxu0 %v811_v18  ;;  %p892_p6 = pnand %p891_p5, %p885_p2 }
  0x3e   :  { %386 = vmatprep.subr.bf16.mxu1 %v918_v0  ;;  %313 = vmatprep.subr.bf16.mxu0 %v812_v19 }
  0x41   :  { %387 = vmatpush1.bf16.msra.mxu1 %v814_v20  ;;  %314 = vmatpush1.bf16.msra.mxu0 %v815_v21 }
  0x42   :  { %388 = vmatprep.subr.bf16.mxu1 %v918_v0  ;;  %315 = vmatprep.subr.bf16.mxu0 %v816_v23 }
  0x45   :  { %389 = vmatpush1.bf16.msra.mxu1 %v818_v24  ;;  %316 = vmatpush1.bf16.msra.mxu0 %v819_v25 }
  0x46   :  { %390 = vmatprep.subr.bf16.mxu1 %v918_v0  ;;  %317 = vmatprep.subr.bf16.mxu0 %v820_v26 }
  0x49   :  { %391 = vmatpush1.bf16.msra.mxu1 %v822_v27  ;;  %318 = vmatpush1.bf16.msra.mxu0 %v823_v28 }
  0x4a   :  { %392 = vmatprep.subr.bf16.mxu1 %v918_v0  ;;  %319 = vmatprep.subr.bf16.mxu0 %v824_v29 }
  0x4d   :  { %393 = vmatpush1.bf16.msra.mxu1 %v826_v30  ;;  %320 = vmatpush1.bf16.msra.mxu0 %v827_v31 }
  0x50   :  { %407 = vmatmul.mubr.bf16.vlgmr.msra.gmra.mrb[0].mxu1 %v828_v32  ;;  %334 = vmatmul.mubr.bf16.vlgmr.msra.gmra.mrb[0].mxu0 %v828_v32 }
  0x51   :  { %777 = vmatprep.mubr.msk.bf16.mxu1 %vm288_vm0, %v831_v33  ;;  %773 = vmatprep.mubr.msk.bf16.mxu0 %vm288_vm0, %v831_v33 }
  0x58   :  { %415 = vmatmul.mubr.bf16.gmra.mrb[4].mxu1 %v833_v34  ;;  %344 = vmatmul.mubr.bf16.gmra.mrb[4].mxu0 %v833_v34 }
  0x59   :  { %778 = vmatprep.mubr.msk.bf16.mxu1 %vm288_vm0, %v834_v35  ;;  %774 = vmatprep.mubr.msk.bf16.mxu0 %vm288_vm0, %v834_v35 }
  0x60   :  { %423 = vmatmul.mubr.bf16.gmra.mrb[8].mxu1 %v836_v36  ;;  %354 = vmatmul.mubr.bf16.gmra.mrb[8].mxu0 %v836_v36 }
  0x61   :  { %779 = vmatprep.mubr.msk.bf16.mxu1 %vm288_vm0, %v837_v37  ;;  %775 = vmatprep.mubr.msk.bf16.mxu0 %vm288_vm0, %v837_v37 }
  0x68   :  { %431 = vmatmul.mubr.bf16.gmra.mrb[12].mxu1 %v839_v38  ;;  %364 = vmatmul.mubr.bf16.gmra.mrb[12].mxu0 %v839_v38 }
 0x123   :  { %v408_v41 = vpop.f32.mrb[0].mxu1  ;;  %v335_v43 = vpop.f32.mrb[0].mxu0 }
 0x124   :  { %v603_v42 = vsel %vm602_vm1, %v408_v41, -inf  ;;  %v410_v44 = vpop.f32.mrb[1].mxu1  ;;  %v441_v47 = vsel %vm440_vm2, %v335_v43, -inf  ;;  %v337_v48 = vpop.f32.mrb[1].mxu0 }
 0x125   :  { %v604_v45 = vrot.slane %v603_v42, 4  ;;  %v411_v49 = vpop.f32.mrb[2].mxu1  ;;  %v442_v50 = vrot.slane %v441_v47, 4  ;;  %v518_v52 = vsel %vm517_vm3, %v337_v48, -inf  ;;  %v339_v54 = vpop.f32.mrb[2].mxu0 }
 0x126   :  { %v610_v53 = vsel %vm602_vm1, %v411_v49, -inf  ;;  %v413_v55 = vpop.f32.mrb[3].mxu1  ;;  %v519_v58 = vrot.slane %v518_v52, 4  ;;  %v448_v60 = vsel %vm440_vm2, %v339_v54, -inf  ;;  %v341_v61 = vpop.f32.mrb[3].mxu0 }
 0x127   :  { %v605_v57 = vmax.f32 %v603_v42, %v604_v45  ;;  %v611_v59 = vrot.slane %v610_v53, 4  ;;  %v443_v62 = vmax.f32 %v441_v47, %v442_v50  ;;  %v449_v0 = vrot.slane %v448_v60, 4 }
 0x128   :  { %v525_v1 = vsel %vm517_vm3, %v341_v61, -inf  ;;  %v520_v3 = vmax.f32 %v518_v52, %v519_v58 }
 0x129   :  { %v606_v2 = vrot.slane %v605_v57, 2  ;;  %v612_v4 = vmax.f32 %v610_v53, %v611_v59  ;;  %v526_v5 = vrot.slane %v525_v1, 4  ;;  %v444_v7 = vrot.slane %v443_v62, 2 }
 0x12a   :  { %v450_v9 = vmax.f32 %v448_v60, %v449_v0  ;;  %v521_v11 = vrot.slane %v520_v3, 2 }
 0x12b   :  { %v607_v10 = vmax.f32 %v605_v57, %v606_v2  ;;  %v613_v12 = vrot.slane %v612_v4, 2  ;;  %v527_v13 = vmax.f32 %v525_v1, %v526_v5  ;;  %v416_v14 = vpop.f32.mrb[4].mxu1  ;;  %v445_v15 = vmax.f32 %v443_v62, %v444_v7  ;;  %v345_v19 = vpop.f32.mrb[4].mxu0 }
 0x12c   :  { %v451_v17 = vrot.slane %v450_v9, 2  ;;  %v617_v18 = vsel %vm602_vm1, %v416_v14, -inf  ;;  %v418_v20 = vpop.f32.mrb[5].mxu1  ;;  %v522_v22 = vmax.f32 %v520_v3, %v521_v11  ;;  %v347_v25 = vpop.f32.mrb[5].mxu0  ;;  %v455_v30 = vsel %vm440_vm2, %v345_v19, -inf }
 0x12d   :  { %v608_v21 = vrot.slane %v607_v10, 1  ;;  %v614_v23 = vmax.f32 %v612_v4, %v613_v12  ;;  %v528_v24 = vrot.slane %v527_v13, 2  ;;  %v419_v26 = vpop.f32.mrb[6].mxu1  ;;  %v446_v27 = vrot.slane %v445_v15, 1  ;;  %v349_v31 = vpop.f32.mrb[6].mxu0 }
 0x12e   :  { %v452_v28 = vmax.f32 %v450_v9, %v451_v17  ;;  %v618_v29 = vrot.slane %v617_v18, 4  ;;  %v421_v32 = vpop.f32.mrb[7].mxu1  ;;  %v523_v34 = vrot.slane %v522_v22, 1  ;;  %v351_v37 = vpop.f32.mrb[7].mxu0  ;;  %v456_v41 = vrot.slane %v455_v30, 4 }
 0x12f   :  { %v609_v33 = vmax.f32 %v607_v10, %v608_v21  ;;  %v615_v35 = vrot.slane %v614_v23, 1  ;;  %v529_v36 = vmax.f32 %v527_v13, %v528_v24  ;;  %v447_v38 = vmax.f32 %v445_v15, %v446_v27 }
 0x130   :  { %v453_v39 = vrot.slane %v452_v28, 1  ;;  %v619_v40 = vmax.f32 %v617_v18, %v618_v29  ;;  %v524_v43 = vmax.f32 %v522_v22, %v523_v34  ;;  %v457_v49 = vmax.f32 %v455_v30, %v456_v41 }
 0x131   :  { %v663_v42 = vadd.f32 %v991_v6, %v609_v33  ;;  %v616_v44 = vmax.f32 %v614_v23, %v615_v35  ;;  %v530_v45 = vrot.slane %v529_v36, 1  ;;  %v501_v46 = vadd.f32 %v993_v8, %v447_v38 }
 0x132   :  { %v454_v47 = vmax.f32 %v452_v28, %v453_v39  ;;  %v620_v48 = vrot.slane %v619_v40, 2  ;;  %v578_v51 = vadd.f32 %v995_v16, %v524_v43  ;;  %v458_v58 = vrot.slane %v457_v49, 2 }
 0x133   :  { %v671_v50 = vmax.f32 %v663_v42, 0.0  ;;  %v664_v52 = vadd.f32 %v991_v6, %v616_v44  ;;  %v531_v53 = vmax.f32 %v529_v36, %v530_v45  ;;  %v424_v54 = vpop.f32.mrb[8].mxu1  ;;  %v509_v55 = vmax.f32 %v501_v46, 0.0  ;;  %v355_v59 = vpop.f32.mrb[8].mxu0 }
 0x134   :  { %v502_v56 = vadd.f32 %v993_v8, %v454_v47  ;;  %v621_v57 = vmax.f32 %v619_v40, %v620_v48  ;;  %v426_v60 = vpop.f32.mrb[9].mxu1  ;;  %v586_v61 = vmax.f32 %v578_v51, 0.0  ;;  %v532_v0 = vsel %vm517_vm3, %v347_v25, -inf  ;;  %v357_v1 = vpop.f32.mrb[9].mxu0 }
 0x135   :  { %v672_v62 = vmax.f32 %v664_v52, 0.0  ;;  %v579_v63 = vadd.f32 %v995_v16, %v531_v53  ;;  %v427_v2 = vpop.f32.mrb[10].mxu1  ;;  %v459_v5 = vmax.f32 %v457_v49, %v458_v58  ;;  %v533_v7 = vrot.slane %v532_v0, 4  ;;  %v1006_v9 = vpop.f32.mrb[10].mxu0 }
 0x136   :  { %v510_v3 = vmax.f32 %v502_v56, 0.0  ;;  %v622_v4 = vrot.slane %v621_v57, 1  ;;  %v429_v10 = vpop.f32.mrb[11].mxu1  ;;  %v594_v11 = vadd.f32 %v586_v61, %v509_v55  ;;  %v624_v13 = vsel %vm602_vm1, %v419_v26, -inf  ;;  %v1010_v15 = vpop.f32.mrb[11].mxu0 }
 0x137   :  { %v587_v12 = vmax.f32 %v579_v63, 0.0  ;;  %v462_v14 = vsel %vm440_vm2, %v349_v31, -inf  ;;  %v460_v18 = vrot.slane %v459_v5, 1  ;;  %v534_v19 = vmax.f32 %v532_v0, %v533_v7 }
 0x138   :  { %v623_v17 = vmax.f32 %v621_v57, %v622_v4  ;;  %v625_v20 = vrot.slane %v624_v13, 4  ;;  %v1012_v21 = vadd.f32 %v671_v50, %v594_v11  ;;  %v463_v23 = vrot.slane %v462_v14, 4 }
 0x139   :  { %v595_v22 = vadd.f32 %v587_v12, %v510_v3  ;;  %v539_v24 = vsel %vm517_vm3, %v351_v37, -inf  ;;  %v461_v27 = vmax.f32 %v459_v5, %v460_v18  ;;  %v535_v28 = vrot.slane %v534_v19, 2 }
 0x13a   :  { %v1016_v25 = vadd.f32 %v991_v6, %v623_v17  ;;  %v626_v26 = vmax.f32 %v624_v13, %v625_v20  ;;  %v464_v30 = vmax.f32 %v462_v14, %v463_v23  ;;  %v540_v31 = vrot.slane %v539_v24, 4 }
 0x13b   :  { %v1018_v29 = vadd.f32 %v672_v62, %v595_v22  ;;  %v631_v32 = vsel %vm602_vm1, %v424_v54, -inf  ;;  %v1021_v33 = vpop.f32.mrb[12].mxu1  ;;  %v503_v34 = vadd.f32 %v993_v8, %v461_v27  ;;  %v536_v35 = vmax.f32 %v534_v19, %v535_v28  ;;  %v1024_v38 = vpop.f32.mrb[12].mxu0 }
 0x13c   :  { %v627_v36 = vrot.slane %v626_v26, 2  ;;  %v434_v37 = vpop.f32.mrb[13].mxu1  ;;  %v673_v39 = vmax.f32 %v1016_v25, 0.0  ;;  %v465_v40 = vrot.slane %v464_v30, 2  ;;  %v541_v41 = vmax.f32 %v539_v24, %v540_v31  ;;  %v1027_v43 = vpop.f32.mrb[13].mxu0 }
 0x13d   :  { %v632_v42 = vrot.slane %v631_v32, 4  ;;  %v1029_v44 = vpop.f32.mrb[14].mxu1  ;;  %v511_v45 = vmax.f32 %v503_v34, 0.0  ;;  %v537_v46 = vrot.slane %v536_v35, 1  ;;  %v469_v48 = vsel %vm440_vm2, %v355_v59, -inf  ;;  %v1032_v49 = vpop.f32.mrb[14].mxu0 }
 0x13e   :  { %v628_v47 = vmax.f32 %v626_v26, %v627_v36  ;;  %v437_v50 = vpop.f32.mrb[15].mxu1  ;;  %v466_v51 = vmax.f32 %v464_v30, %v465_v40  ;;  %v542_v52 = vrot.slane %v541_v41, 2  ;;  %v470_v54 = vrot.slane %v469_v48, 4  ;;  %v1034_v55 = vpop.f32.mrb[15].mxu0 }
 0x13f   :  { %v633_v53 = vmax.f32 %v631_v32, %v632_v42  ;;  %v538_v56 = vmax.f32 %v536_v35, %v537_v46  ;;  %v546_v58 = vsel %vm517_vm3, %v357_v1, -inf  ;;  %v638_v60 = vsel %vm602_vm1, %v427_v2, -inf }
 0x140   :  { %v629_v57 = vrot.slane %v628_v47, 1  ;;  %v467_v61 = vrot.slane %v466_v51, 1  ;;  %v543_v62 = vmax.f32 %v541_v41, %v542_v52  ;;  %v471_v0 = vmax.f32 %v469_v48, %v470_v54 }
 0x141   :  { %v634_v63 = vrot.slane %v633_v53, 2  ;;  %v580_v59 = vadd.f32 %v995_v16, %v538_v56  ;;  %v547_v4 = vrot.slane %v546_v58, 4  ;;  %v639_v5 = vrot.slane %v638_v60, 4 }
 0x142   :  { %v630_v3 = vmax.f32 %v628_v47, %v629_v57  ;;  %v468_v7 = vmax.f32 %v466_v51, %v467_v61  ;;  %v544_v10 = vrot.slane %v543_v62, 1  ;;  %v472_v12 = vrot.slane %v471_v0, 2 }
 0x143   :  { %v635_v11 = vmax.f32 %v633_v53, %v634_v63  ;;  %v695_v13 = vrot.slane %v1018_v29, 7  ;;  %v588_v14 = vmax.f32 %v580_v59, 0.0  ;;  %v548_v17 = vmax.f32 %v546_v58, %v547_v4 }
 0x144   :  { %v640_v1 = vmax.f32 %v638_v60, %v639_v5  ;;  %v504_v2 = vadd.f32 %v993_v8, %v468_v7  ;;  %v545_v18 = vmax.f32 %v543_v62, %v544_v10  ;;  %v473_v20 = vmax.f32 %v471_v0, %v472_v12 }
 0x145   :  { %v636_v19 = vrot.slane %v635_v11, 1  ;;  %v596_v22 = vadd.f32 %v588_v14, %v511_v45  ;;  %v666_v23 = vadd.f32 %v991_v6, %v630_v3  ;;  %v549_v24 = vrot.slane %v548_v17, 2 }
 0x146   :  { %v641_v25 = vrot.slane %v640_v1, 2  ;;  %v512_v27 = vmax.f32 %v504_v2, 0.0  ;;  %v581_v28 = vadd.f32 %v995_v16, %v545_v18  ;;  %v474_v30 = vrot.slane %v473_v20, 1 }
 0x147   :  { %v637_v26 = vmax.f32 %v635_v11, %v636_v19  ;;  %v1043_v31 = vadd.f32 %v673_v39, %v596_v22  ;;  %v550_v32 = vmax.f32 %v548_v17, %v549_v24  ;;  %v476_v35 = vsel %vm440_vm2, %v1006_v9, -inf }
 0x148   :  { %v642_v34 = vmax.f32 %v640_v1, %v641_v25  ;;  %v589_v36 = vmax.f32 %v581_v28, 0.0  ;;  %v475_v40 = vmax.f32 %v473_v20, %v474_v30  ;;  %v477_v41 = vrot.slane %v476_v35, 4 }
 0x149   :  { %v667_v37 = vadd.f32 %v991_v6, %v637_v26  ;;  %v674_v42 = vmax.f32 %v666_v23, 0.0  ;;  %v551_v45 = vrot.slane %v550_v32, 1  ;;  %v553_v47 = vsel %vm517_vm3, %v1010_v15, -inf }
 0x14a   :  { %v643_v46 = vrot.slane %v642_v34, 1  ;;  %v698_v48 = vrot.slane %v1043_v31, 6  ;;  %v597_v39 = vadd.f32 %v589_v36, %v512_v27  ;;  %v505_v50 = vadd.f32 %v993_v8, %v475_v40 }
 0x14b   :  { %v478_v51 = vmax.f32 %v476_v35, %v477_v41  ;;  %v552_v52 = vmax.f32 %v550_v32, %v551_v45  ;;  %v554_v9 = vrot.slane %v553_v47, 4  ;;  %v645_v54 = vsel %vm602_vm1, %v1021_v33, -inf }
 0x14c   :  { %v644_v53 = vmax.f32 %v642_v34, %v643_v46  ;;  %v1054_v56 = vadd.f32 %v674_v42, %v597_v39  ;;  %v675_v57 = vmax.f32 %v667_v37, 0.0  ;;  %v646_v60 = vrot.slane %v645_v54, 4 }
 0x14d   :  { %v479_v58 = vrot.slane %v478_v51, 2  ;;  %v513_v61 = vmax.f32 %v505_v50, 0.0  ;;  %v582_v15 = vadd.f32 %v995_v16, %v552_v52  ;;  %v555_v62 = vmax.f32 %v553_v47, %v554_v9 }
 0x14e   :  { %v483_v63 = vsel %vm440_vm2, %v1024_v38, -inf  ;;  %v1060_v0 = vadd.f32 %v991_v6, %v644_v53  ;;  %v647_v3 = vmax.f32 %v645_v54, %v646_v60  ;;  %v701_v33 = vrot.slane %v1054_v56, 5 }
 0x14f   :  { %v480_v59 = vmax.f32 %v478_v51, %v479_v58  ;;  %v484_v4 = vrot.slane %v483_v63, 4  ;;  %v590_v5 = vmax.f32 %v582_v15, 0.0  ;;  %v556_v7 = vrot.slane %v555_v62, 2 }
 0x150   :  { %v560_v10 = vsel %vm517_vm3, %v1027_v43, -inf  ;;  %v648_v12 = vrot.slane %v647_v3, 2  ;;  %v652_v2 = vsel %vm602_vm1, %v1029_v44, -inf  ;;  %v490_v18 = vsel %vm440_vm2, %v1032_v49, -inf }
 0x151   :  { %v481_v11 = vrot.slane %v480_v59, 1  ;;  %v485_v14 = vmax.f32 %v483_v63, %v484_v4  ;;  %v561_v17 = vrot.slane %v560_v10, 4  ;;  %v598_v38 = vadd.f32 %v590_v5, %v513_v61 }
 0x152   :  { %v557_v1 = vmax.f32 %v555_v62, %v556_v7  ;;  %v649_v20 = vmax.f32 %v647_v3, %v648_v12  ;;  %v653_v25 = vrot.slane %v652_v2, 4  ;;  %v491_v27 = vrot.slane %v490_v18, 4 }
 0x153   :  { %v482_v19 = vmax.f32 %v480_v59, %v481_v11  ;;  %v486_v22 = vrot.slane %v485_v14, 2  ;;  %v562_v23 = vmax.f32 %v560_v10, %v561_v17  ;;  %v683_v43 = vadd.f32 %v675_v57, %v598_v38 }
 0x154   :  { %v558_v24 = vrot.slane %v557_v1, 1  ;;  %v650_v26 = vrot.slane %v649_v20, 1  ;;  %v676_v44 = vmax.f32 %v1060_v0, 0.0  ;;  %v654_v35 = vmax.f32 %v652_v2, %v653_v25 }
 0x155   :  { %v506_v28 = vadd.f32 %v993_v8, %v482_v19  ;;  %v487_v30 = vmax.f32 %v485_v14, %v486_v22  ;;  %v563_v32 = vrot.slane %v562_v23, 2  ;;  %v492_v49 = vmax.f32 %v490_v18, %v491_v27 }
 0x156   :  { %v559_v34 = vmax.f32 %v557_v1, %v558_v24  ;;  %v651_v37 = vmax.f32 %v649_v20, %v650_v26  ;;  %v655_v45 = vrot.slane %v654_v35, 2  ;;  %v567_v47 = vsel %vm517_vm3, %v1034_v55, -inf }
 0x157   :  { %v514_v36 = vmax.f32 %v506_v28, 0.0  ;;  %v488_v40 = vrot.slane %v487_v30, 1  ;;  %v564_v41 = vmax.f32 %v562_v23, %v563_v32  ;;  %v493_v46 = vrot.slane %v492_v49, 2 }
 0x158   :  { %v583_v42 = vadd.f32 %v995_v16, %v559_v34  ;;  %v704_v39 = vrot.slane %v683_v43, 4  ;;  %v568_v52 = vrot.slane %v567_v47, 4  ;;  %v656_v9 = vmax.f32 %v654_v35, %v655_v45 }
 0x159   :  { %v489_v50 = vmax.f32 %v487_v30, %v488_v40  ;;  %v565_v51 = vrot.slane %v564_v41, 1  ;;  %v494_v54 = vmax.f32 %v492_v49, %v493_v46  ;;  %v697_v56 = vsel %vm696_vm4, %v695_v13, %v1012_v21 }
 0x15a   :  { %v591_v53 = vmax.f32 %v583_v42, 0.0  ;;  %v669_v57 = vadd.f32 %v991_v6, %v651_v37  ;;  %v569_v61 = vmax.f32 %v567_v47, %v568_v52  ;;  %v657_v55 = vrot.slane %v656_v9, 1 }
 0x15b   :  { %v507_v58 = vadd.f32 %v993_v8, %v489_v50  ;;  %v566_v60 = vmax.f32 %v564_v41, %v565_v51  ;;  %v495_v62 = vrot.slane %v494_v54, 1  ;;  %v700_v63 = vsel %vm699_vm5, %v698_v48, %v697_v56 }
 0x15c   :  { %v599_v15 = vadd.f32 %v591_v53, %v514_v36  ;;  %v570_v3 = vrot.slane %v569_v61, 2  ;;  %v703_v29 = vsel %vm702_vm6, %v701_v33, %v700_v63  ;;  %v677_v10 = vmax.f32 %v669_v57, 0.0 }
 0x15d   :  { %v515_v0 = vmax.f32 %v507_v58, 0.0  ;;  %v584_v59 = vadd.f32 %v995_v16, %v566_v60  ;;  %v496_v13 = vmax.f32 %v494_v54, %v495_v62  ;;  %v706_v4 = vsel %vm705_vm7, %v704_v39, %v703_v29 }
 0x15e   :  { %v684_v21 = vadd.f32 %v676_v44, %v599_v15  ;;  %v571_v7 = vmax.f32 %v569_v61, %v570_v3  ;;  %v658_v14 = vmax.f32 %v656_v9, %v657_v55 }
 0x15f   :  { %v592_v5 = vmax.f32 %v584_v59, 0.0  ;;  %v508_v31 = vadd.f32 %v993_v8, %v496_v13 }
 0x160   :  { %v707_v11 = vrot.slane %v684_v21, 3  ;;  %v572_v48 = vrot.slane %v571_v7, 1  ;;  %v670_v33 = vadd.f32 %v991_v6, %v658_v14 }
 0x161   :  { %v600_v12 = vadd.f32 %v592_v5, %v515_v0  ;;  %v516_v2 = vmax.f32 %v508_v31, 0.0 }
 0x162   :  { %v709_v17 = vsel %vm708_vm8, %v707_v11, %v706_v4  ;;  %v573_v38 = vmax.f32 %v571_v7, %v572_v48  ;;  %v678_v23 = vmax.f32 %v670_v33, 0.0 }
 0x163   :  { %v685_v1 = vadd.f32 %v677_v10, %v600_v12 }
 0x164   :  { %v585_v18 = vadd.f32 %v995_v16, %v573_v38 }
 0x165   :  { %v710_v19 = vrot.slane %v685_v1, 2 }
 0x166   :  { %v593_v20 = vmax.f32 %v585_v18, 0.0 }
 0x167   :  { %v712_v22 = vsel %vm711_vm9, %v710_v19, %v709_v17 }
 0x168   :  { %v601_v43 = vadd.f32 %v593_v20, %v516_v2 }
 0x16a   :  { %v686_v24 = vadd.f32 %v678_v23, %v601_v43 }
 0x16c   :  { %v713_v8 = vrot.slane %v686_v24, 1 }
 0x16e   :  { %v715_v25 = vsel %vm714_vm10, %v713_v8, %v712_v22 }
 0x16f   :  { %717 = vst [vmem:[#allocation7] sm:$0xff] %v715_v25 }
 0x170   :  { %895 = shalt.err (!%p892_p6)
}
 0x171   :  { %s896_s17 = scalar_lea.hbm %s1104_s3, 128 }
 0x172   :  { %p897_p7 = scmp.ne.s32.totalorder %s1104_s3, %s896_s17  ;;  %p900_p8 = scmp.lt.u32.totalorder %s896_s17, %s1104_s3 }
 0x174   :  { %p902_p9 = pnand %p900_p8, %p897_p7 }
 0x176   :  { %905 = shalt.err (!%p902_p9)
}
 0x177   :  { %727 = dma.vmem_to_hbm [thread:$0]  %s725_s13, 128, %s1104_s3, [#allocation4]  }
 0x178   :  { %910 = dma.done.wait [#allocation4], 128  }
 0x179   :  { %911 = vsyncadd [#allocation4], 4294967168 }
 0x17a   :  { %731 = vsyncpa [#allocation3], 1 }
 0x17b   :  { %732 = vsyncpa [#allocation6], 1 }
 0x17c   :  { %733 = vsyncpa [#allocation4], 1 }

</bundles_post_ra>
